<compile_context>
chip_gen: v6e
topology: v6e:2x2x1
jax: 0.10.0
libtpu: 0.0.40
codegen_flags: <defaults>
</compile_context>

<pallas_src>
import functools

import jax
import jax.numpy as jnp
from jax.experimental import pallas as pl
from jax.experimental.pallas import tpu as pltpu


def _round_up(v, m):
    return ((v + m - 1) // m) * m


def gin_kernel(adj_ref, x_ref, w1t_ref, b1_ref, w2t_ref, b2_ref, out_ref, *, tk):
    k = pl.program_id(1)

    @pl.when(k == 0)
    def _():
        out_ref[...] = jnp.zeros_like(out_ref)

    # int8 adjacency tile -> bf16 (VPU upcast, hidden under the HBM DMA stream).
    a = adj_ref[...].astype(jnp.bfloat16)
    # X is VMEM-resident for the whole grid; slice the k-th reduction chunk here.
    start = pl.multiple_of(k * tk, tk)
    xb = x_ref[pl.ds(start, tk), :]
    # Aggregation accumulates straight into the f32 output block (resident across k).
    out_ref[...] += jnp.dot(a, xb, preferred_element_type=jnp.float32)

    @pl.when(k == pl.num_programs(1) - 1)
    def _():
        agg = out_ref[...]                                    # [tm, DP] f32
        # MLP layer 1: Linear + ReLU (bf16 MXU operands, f32 bias/activation).
        h = jnp.dot(agg.astype(jnp.bfloat16), w1t_ref[...],
                    preferred_element_type=jnp.float32) + b1_ref[...]
        h = jnp.maximum(h, 0.0)
        # MLP layer 2: Linear.
        out = jnp.dot(h.astype(jnp.bfloat16), w2t_ref[...],
                      preferred_element_type=jnp.float32) + b2_ref[...]
        out_ref[...] = out.astype(out_ref.dtype)


def meta_gin_forward(x, edge_index, w1, b1, w2, b2):
    """x: [N, D] float32 node features; edge_index: [2, E] int32 (src, dst)."""
    N, D = x.shape
    src = edge_index[0]
    dst = edge_index[1]

    # ---- lane-dense feature dim --------------------------------------------
    DP = _round_up(D, 128)

    # ---- row tile: large for BW, >=2 row tiles whenever N > 128 (megacore) ---
    if N <= 512:
        tm = 128
    elif N <= 1024:
        tm = 256
    else:
        tm = 512
    NPr = _round_up(N, tm)

    # ---- reduction (column) tile: as large as possible (amortizes ~0.35us/step
    #      grid overhead), 256-aligned, keeping padded zero-columns <= ~12.5% ----
    base = _round_up(N, 256)
    tk, NPc = 256, base
    for cand in (2048, 1024, 512):
        padded = _round_up(N, cand)
        if padded * 8 <= base * 9:            # <= 12.5% extra column padding
            tk, NPc = cand, padded
            break

    grid = (NPr // tm, NPc // tk)             # reduction axis last

    # ---- adjacency with self term folded in: A + I, single scatter, int8 ------
    # (scatter-add done in native int32, then one cast; int8 is exact for edge
    #  multiplicities <= 127.)
    diag = jnp.arange(N, dtype=src.dtype)
    rows = jnp.concatenate([dst, diag])
    cols = jnp.concatenate([src, diag])
    adj = (jnp.zeros((NPr, NPc), jnp.int32).at[rows, cols].add(1)).astype(jnp.int8)

    # ---- padded operands -------------------------------------------------------
    x_p = jnp.zeros((NPc, DP), jnp.bfloat16).at[:N, :D].set(x.astype(jnp.bfloat16))
    w1t = jnp.zeros((DP, DP), jnp.bfloat16).at[:D, :D].set(w1.T.astype(jnp.bfloat16))
    w2t = jnp.zeros((DP, DP), jnp.bfloat16).at[:D, :D].set(w2.T.astype(jnp.bfloat16))
    b1r = jnp.zeros((1, DP), jnp.float32).at[0, :D].set(b1)
    b2r = jnp.zeros((1, DP), jnp.float32).at[0, :D].set(b2)

    # ---- generation-aware VMEM limit (3/4 of physical VMEM) --------------------
    try:
        vmem_cap = int(getattr(pltpu.get_tpu_info(), "vmem_capacity_bytes",
                               64 * 1024 * 1024))
    except Exception:  # conservative fallback if the query is unavailable
        vmem_cap = 64 * 1024 * 1024
    vmem_limit = (vmem_cap * 3) // 4

    # ---- advisory cost hint -----------------------------------------------------
    flops = 2 * NPr * NPc * DP + 4 * NPr * DP * DP
    bytes_accessed = (NPr * NPc * 1           # int8 adjacency (dominant stream)
                      + NPc * DP * 2          # X, read once (VMEM-resident)
                      + NPr * DP * 4          # output
                      + 2 * DP * DP * 2 + 2 * DP * 4)
    cost = pl.CostEstimate(flops=flops, transcendentals=0,
                           bytes_accessed=bytes_accessed)

    kernel = functools.partial(gin_kernel, tk=tk)

    out_p = pl.pallas_call(
        kernel,
        out_shape=jax.ShapeDtypeStruct((NPr, DP), jnp.float32),
        grid_spec=pltpu.PrefetchScalarGridSpec(
            num_scalar_prefetch=0,
            grid=grid,
            in_specs=[
                pl.BlockSpec((tm, tk), lambda i, k: (i, k)),    # int8 (A+I) tile
                pl.BlockSpec((NPc, DP), lambda i, k: (0, 0)),   # X (fully resident)
                pl.BlockSpec((DP, DP), lambda i, k: (0, 0)),    # W1^T (resident)
                pl.BlockSpec((1, DP), lambda i, k: (0, 0)),     # b1   (resident)
                pl.BlockSpec((DP, DP), lambda i, k: (0, 0)),    # W2^T (resident)
                pl.BlockSpec((1, DP), lambda i, k: (0, 0)),     # b2   (resident)
            ],
            out_specs=pl.BlockSpec((tm, DP), lambda i, k: (i, 0)),
        ),
        compiler_params=pltpu.CompilerParams(
            dimension_semantics=("parallel", "arbitrary"),
            vmem_limit_bytes=vmem_limit,
        ),
        cost_estimate=cost,
    )(adj, x_p, w1t, b1r, w2t, b2r)

    return out_p[:N, :D]


def reference_forward(x, edge_index, w1, b1, w2, b2):
    N, D = x.shape
    src = edge_index[0]
    dst = edge_index[1]
    adj = jnp.zeros((N, N), jnp.float32).at[dst, src].add(1.0)
    agg = x + adj @ x
    h = jnp.maximum(agg @ w1.T + b1, 0.0)
    return h @ w2.T + b2


if __name__ == "__main__":
    N = 16   # number of nodes
    D = 32   # in_features == out_features (both Linears share the same shape)
    E = 40   # number of edges

    key = jax.random.PRNGKey(0)
    kx, ke, kw1, kb1, kw2, kb2 = jax.random.split(key, 6)

    # Node features and edge index (n_id interpreted as the node feature matrix).
    x = jax.random.normal(kx, (N, D), dtype=jnp.float32)
    edge_index = jax.random.randint(ke, (2, E), 0, N, dtype=jnp.int32)

    # Deterministic nn.Linear-style init: U(-1/sqrt(fan_in), 1/sqrt(fan_in)).
    bound = 1.0 / jnp.sqrt(jnp.float32(D))
    w1 = jax.random.uniform(kw1, (D, D), jnp.float32, -bound, bound)
    b1 = jax.random.uniform(kb1, (D,), jnp.float32, -bound, bound)
    w2 = jax.random.uniform(kw2, (D, D), jnp.float32, -bound, bound)
    b2 = jax.random.uniform(kb2, (D,), jnp.float32, -bound, bound)

    out = jax.block_until_ready(meta_gin_forward(x, edge_index, w1, b1, w2, b2))
    ref = jax.block_until_ready(reference_forward(x, edge_index, w1, b1, w2, b2))

    assert out.shape == (N, D)
    # bf16 MXU operands vs f32 reference -> relaxed (but meaningful) tolerance.
    assert jnp.allclose(out, ref, atol=5e-2, rtol=5e-2), (
        "mismatch vs. reference; max abs err = "
        f"{float(jnp.max(jnp.abs(out - ref)))}"
    )
    print("KERNEL_OK")
</pallas_src>

<mosaic_0001>
module attributes {stable_mosaic.version = 11 : i64} {
  func.func @gin_kernel(%arg0: i32, %arg1: i32, %arg2: memref<128x256xi8, #tpu.memory_space<vmem>>, %arg3: memref<256x128xbf16, #tpu.memory_space<vmem>>, %arg4: memref<128x128xbf16, #tpu.memory_space<vmem>>, %arg5: memref<1x128xf32, #tpu.memory_space<vmem>>, %arg6: memref<128x128xbf16, #tpu.memory_space<vmem>>, %arg7: memref<1x128xf32, #tpu.memory_space<vmem>>, %arg8: memref<128x128xf32, #tpu.memory_space<vmem>>) attributes {dimension_semantics = [#tpu.dimension_semantics<parallel>, #tpu.dimension_semantics<arbitrary>], iteration_bounds = array<i64: 1, 1>, scalar_prefetch = 0 : i64, scratch_operands = 0 : i64, tpu.core_type = #tpu.core_type<tc>, window_params = [{transform_indices = @transform_0, window_bounds = array<i64: 128, 256>}, {pipeline_mode = #tpu.pipeline_mode<synchronous>, transform_indices = @transform_1, window_bounds = array<i64: 256, 128>}, {pipeline_mode = #tpu.pipeline_mode<synchronous>, transform_indices = @transform_2, window_bounds = array<i64: 128, 128>}, {pipeline_mode = #tpu.pipeline_mode<synchronous>, transform_indices = @transform_3, window_bounds = array<i64: 1, 128>}, {pipeline_mode = #tpu.pipeline_mode<synchronous>, transform_indices = @transform_4, window_bounds = array<i64: 128, 128>}, {pipeline_mode = #tpu.pipeline_mode<synchronous>, transform_indices = @transform_5, window_bounds = array<i64: 1, 128>}, {transform_indices = @transform_6, window_bounds = array<i64: 128, 128>}]} {
    %c0_i32 = arith.constant 0 : i32
    %0 = arith.cmpi eq, %arg1, %c0_i32 : i32
    %1 = arith.extui %0 : i1 to i32
    %c0_i32_0 = arith.constant 0 : i32
    %2 = arith.cmpi ne, %1, %c0_i32_0 : i32
    scf.if %2 {
      %cst_9 = arith.constant 0.000000e+00 : f32
      %16 = vector.broadcast %cst_9 : f32 to vector<128x128xf32>
      %c0_10 = arith.constant 0 : index
      %c0_11 = arith.constant 0 : index
      %17 = vector.load %arg8[%c0_10, %c0_11] : memref<128x128xf32, #tpu.memory_space<vmem>>, vector<128x128xf32>
      tpu.vector_store %arg8[%c0_10, %c0_11], %16 {strides = array<i32>} : memref<128x128xf32, #tpu.memory_space<vmem>>, vector<128x128xf32>,
    } else {
    }
    %c0 = arith.constant 0 : index
    %c0_1 = arith.constant 0 : index
    %3 = vector.load %arg2[%c0, %c0_1] : memref<128x256xi8, #tpu.memory_space<vmem>>, vector<128x256xi8>
    %4 = arith.sitofp %3 : vector<128x256xi8> to vector<128x256xbf16>
    %c256_i32 = arith.constant 256 : i32
    %5 = arith.muli %arg1, %c256_i32 : i32
    %6 = tpu.assume_multiple %5, 256 : i32
    %7 = arith.index_cast %6 : i32 to index
    %c0_2 = arith.constant 0 : index
    %8 = vector.load %arg3[%7, %c0_2] : memref<256x128xbf16, #tpu.memory_space<vmem>>, vector<256x128xbf16>
    %c0_3 = arith.constant 0 : index
    %c0_4 = arith.constant 0 : index
    %9 = vector.load %arg8[%c0_3, %c0_4] : memref<128x128xf32, #tpu.memory_space<vmem>>, vector<128x128xf32>
    %cst = arith.constant dense<0.000000e+00> : vector<128x128xf32>
    %10 = tpu.matmul %4, %8, %cst {dimension_numbers = #tpu.dot_dimension_numbers<[1], [0], [0], [1], [0, 0, 1, 1], [], []>} : vector<128x256xbf16>, vector<256x128xbf16>, vector<128x128xf32> -> vector<128x128xf32>
    %11 = arith.addf %9, %10 : vector<128x128xf32>
    %c0_5 = arith.constant 0 : index
    %c0_6 = arith.constant 0 : index
    %12 = vector.load %arg8[%c0_5, %c0_6] : memref<128x128xf32, #tpu.memory_space<vmem>>, vector<128x128xf32>
    tpu.vector_store %arg8[%c0_5, %c0_6], %11 {strides = array<i32>} : memref<128x128xf32, #tpu.memory_space<vmem>>, vector<128x128xf32>,
    %c0_i32_7 = arith.constant 0 : i32
    %13 = arith.cmpi eq, %arg1, %c0_i32_7 : i32
    %14 = arith.extui %13 : i1 to i32
    %c0_i32_8 = arith.constant 0 : i32
    %15 = arith.cmpi ne, %14, %c0_i32_8 : i32
    scf.if %15 {
      %c0_9 = arith.constant 0 : index
      %c0_10 = arith.constant 0 : index
      %16 = vector.load %arg8[%c0_9, %c0_10] : memref<128x128xf32, #tpu.memory_space<vmem>>, vector<128x128xf32>
      %17 = arith.truncf %16 : vector<128x128xf32> to vector<128x128xbf16>
      %c0_11 = arith.constant 0 : index
      %c0_12 = arith.constant 0 : index
      %18 = vector.load %arg4[%c0_11, %c0_12] : memref<128x128xbf16, #tpu.memory_space<vmem>>, vector<128x128xbf16>
      %cst_13 = arith.constant dense<0.000000e+00> : vector<128x128xf32>
      %19 = tpu.matmul %17, %18, %cst_13 {dimension_numbers = #tpu.dot_dimension_numbers<[1], [0], [0], [1], [0, 0, 1, 1], [], []>} : vector<128x128xbf16>, vector<128x128xbf16>, vector<128x128xf32> -> vector<128x128xf32>
      %c0_14 = arith.constant 0 : index
      %c0_15 = arith.constant 0 : index
      %20 = vector.load %arg5[%c0_14, %c0_15] : memref<1x128xf32, #tpu.memory_space<vmem>>, vector<1x128xf32>
      %21 = vector.broadcast %20 : vector<1x128xf32> to vector<128x128xf32>
      %22 = arith.addf %19, %21 : vector<128x128xf32>
      %cst_16 = arith.constant 0.000000e+00 : f32
      %23 = vector.broadcast %cst_16 : f32 to vector<128x128xf32>
      %24 = arith.maximumf %22, %23 : vector<128x128xf32>
      %25 = arith.truncf %24 : vector<128x128xf32> to vector<128x128xbf16>
      %c0_17 = arith.constant 0 : index
      %c0_18 = arith.constant 0 : index
      %26 = vector.load %arg6[%c0_17, %c0_18] : memref<128x128xbf16, #tpu.memory_space<vmem>>, vector<128x128xbf16>
      %cst_19 = arith.constant dense<0.000000e+00> : vector<128x128xf32>
      %27 = tpu.matmul %25, %26, %cst_19 {dimension_numbers = #tpu.dot_dimension_numbers<[1], [0], [0], [1], [0, 0, 1, 1], [], []>} : vector<128x128xbf16>, vector<128x128xbf16>, vector<128x128xf32> -> vector<128x128xf32>
      %c0_20 = arith.constant 0 : index
      %c0_21 = arith.constant 0 : index
      %28 = vector.load %arg7[%c0_20, %c0_21] : memref<1x128xf32, #tpu.memory_space<vmem>>, vector<1x128xf32>
      %29 = vector.broadcast %28 : vector<1x128xf32> to vector<128x128xf32>
      %30 = arith.addf %27, %29 : vector<128x128xf32>
      %c0_22 = arith.constant 0 : index
      %c0_23 = arith.constant 0 : index
      %31 = vector.load %arg8[%c0_22, %c0_23] : memref<128x128xf32, #tpu.memory_space<vmem>>, vector<128x128xf32>
      tpu.vector_store %arg8[%c0_22, %c0_23], %30 {strides = array<i32>} : memref<128x128xf32, #tpu.memory_space<vmem>>, vector<128x128xf32>,
    } else {
    }
    return
  }
  func.func @transform_0(%arg0: i32, %arg1: i32) -> (i32, i32) {
    %c0_i32 = arith.constant 0 : i32
    return %arg0, %arg1 : i32, i32
  }
  func.func @transform_1(%arg0: i32, %arg1: i32) -> (i32, i32) {
    %c0_i32 = arith.constant 0 : i32
    %c0_i32_0 = arith.constant 0 : i32
    %c0_i32_1 = arith.constant 0 : i32
    return %c0_i32, %c0_i32_0 : i32, i32
  }
  func.func @transform_2(%arg0: i32, %arg1: i32) -> (i32, i32) {
    %c0_i32 = arith.constant 0 : i32
    %c0_i32_0 = arith.constant 0 : i32
    %c0_i32_1 = arith.constant 0 : i32
    return %c0_i32, %c0_i32_0 : i32, i32
  }
  func.func @transform_3(%arg0: i32, %arg1: i32) -> (i32, i32) {
    %c0_i32 = arith.constant 0 : i32
    %c0_i32_0 = arith.constant 0 : i32
    %c0_i32_1 = arith.constant 0 : i32
    return %c0_i32, %c0_i32_0 : i32, i32
  }
  func.func @transform_4(%arg0: i32, %arg1: i32) -> (i32, i32) {
    %c0_i32 = arith.constant 0 : i32
    %c0_i32_0 = arith.constant 0 : i32
    %c0_i32_1 = arith.constant 0 : i32
    return %c0_i32, %c0_i32_0 : i32, i32
  }
  func.func @transform_5(%arg0: i32, %arg1: i32) -> (i32, i32) {
    %c0_i32 = arith.constant 0 : i32
    %c0_i32_0 = arith.constant 0 : i32
    %c0_i32_1 = arith.constant 0 : i32
    return %c0_i32, %c0_i32_0 : i32, i32
  }
  func.func @transform_6(%arg0: i32, %arg1: i32) -> (i32, i32) {
    %c0_i32 = arith.constant 0 : i32
    %c0_i32_0 = arith.constant 0 : i32
    return %arg0, %c0_i32 : i32, i32
  }
}

</mosaic_0001>

<bundles_post_ra>
// kernel: tpu_custom_call.1
= control target key start
LH: loop header
LB: loop body
LE: loop exit
PB: predicated region body
PF: predicated region fallthrough
CT: control target
= control target key end

     0   :  { %11 = vsyncpa [#allocation3], 0  ;;  %s1248_s0 = inlined_call_operand.hbm [shape: s8[128,256], index: 0, kind: input, shape index: {}]   ;;  %s1249_s1 = inlined_call_operand.hbm [shape: bf16[256,128], index: 1, kind: input, shape index: {}]   ;;  %s1250_s2 = inlined_call_operand.hbm [shape: bf16[128,128], index: 2, kind: input, shape index: {}]   ;;  %s1251_s3 = inlined_call_operand.vmem [shape: f32[1,128], index: 3, kind: input, shape index: {}]   ;;  %s1252_s4 = inlined_call_operand.hbm [shape: bf16[128,128], index: 4, kind: input, shape index: {}]   ;;  %s1253_s5 = inlined_call_operand.vmem [shape: f32[1,128], index: 5, kind: input, shape index: {}]   ;;  %s1254_s6 = inlined_call_operand.hbm [shape: f32[128,128], index: 6, kind: output, shape index: {}]  }
   0x1   :  { %12 = vsyncpa [#allocation6], 0 }
   0x2   :  { %13 = vsyncpa [#allocation9], 0 }
   0x3   :  { %14 = vsyncpa [#allocation4], 0  ;;  %s1172_s21 = smov [#allocation5]  }
   0x4   :  { %s32_s22 = sshll.u32 %s1172_s21, 4  ;;  %s33_s22 = int_to_ptr.vmem [resolvable:$true] %s32_s22 }
   0x5   :  { %s1072_s23 = scalar_lea.vmem %s33_s22, 2048  ;;  %p1077_p1 = scmp.lt.s32.totalorder %s33_s22, %s33_s22 }
   0x6   :  { %p1073_p0 = scmp.ne.s32.totalorder %s33_s22, %s1072_s23  ;;  %p1078_p2 = scmp.lt.s32.totalorder %s1072_s23, %s1072_s23 }
   0x8   :  { %p1079_p3 = por %p1078_p2, %p1077_p1 }
   0xa   :  { %p1080_p4 = pnand %p1079_p3, %p1073_p0 }
   0xc   :  { %1083 = shalt.err (!%p1080_p4)
}
   0xd   :  { %s1173_s24 = smov 64   ;;  %s1174_s25 = smov 4  }
   0xe   :  { %38 = dma.hbm_to_vmem [thread:$0]  %s1249_s1, 2048, %s33_s22, [#allocation6], %s1173_s24, %s1173_s24, %s1174_s25  }
   0xf   :  { %s1175_s28 = smov [#allocation2]  }
  0x10   :  { %s20_s29 = sshll.u32 %s1175_s28, 4  ;;  %s21_s29 = int_to_ptr.vmem [resolvable:$true] %s20_s29 }
  0x11   :  { %s1092_s30 = scalar_lea.vmem %s21_s29, 1024  ;;  %p1097_p6 = scmp.lt.s32.totalorder %s21_s29, %s21_s29 }
  0x12   :  { %p1093_p5 = scmp.ne.s32.totalorder %s21_s29, %s1092_s30  ;;  %p1098_p7 = scmp.lt.s32.totalorder %s1092_s30, %s1092_s30 }
  0x14   :  { %p1099_p8 = por %p1098_p7, %p1097_p6 }
  0x16   :  { %p1100_p9 = pnand %p1099_p8, %p1093_p5 }
  0x18   :  { %1103 = shalt.err (!%p1100_p9)
}
  0x19   :  { %s1176_s7 = smov 256   ;;  %s1177_s8 = smov 16  }
  0x1a   :  { %26 = dma.hbm_to_vmem [thread:$0]  %s1248_s0, 1024, %s21_s29, [#allocation3], %s1176_s7, %s1176_s7, %s1177_s8  }
  0x1b   :  { %s1178_s11 = smov [#allocation7]   ;;  %s1179_s13 = smov [#allocation8]  }
  0x1c   :  { %s44_s12 = sshll.u32 %s1178_s11, 4  ;;  %s58_s1 = sshll.u32 %s1179_s13, 4  ;;  %s45_s12 = int_to_ptr.vmem [resolvable:$true] %s44_s12  ;;  %s59_s1 = int_to_ptr.vmem [resolvable:$true] %s58_s1 }
  0x1d   :  { %s1112_s14 = scalar_lea.vmem %s45_s12, 1024  ;;  %p1117_p11 = scmp.lt.s32.totalorder %s45_s12, %s45_s12 }
  0x1e   :  { %p1113_p10 = scmp.ne.s32.totalorder %s45_s12, %s1112_s14  ;;  %p1118_p12 = scmp.lt.s32.totalorder %s1112_s14, %s1112_s14 }
  0x20   :  { %p1119_p13 = por %p1118_p12, %p1117_p11 }
  0x22   :  { %p1120_p0 = pnand %p1119_p13, %p1113_p10 }
  0x24   :  { %1123 = shalt.err (!%p1120_p0)
}
  0x25   :  { %50 = dma.hbm_to_vmem [thread:$0]  %s1250_s2, 1024, %s45_s12, [#allocation6], %s1173_s24, %s1173_s24, %s1174_s25  }
  0x26   :  { %s1132_s0 = scalar_lea.vmem %s59_s1, 1024  ;;  %p1137_p2 = scmp.lt.s32.totalorder %s59_s1, %s59_s1 }
  0x27   :  { %p1133_p1 = scmp.ne.s32.totalorder %s59_s1, %s1132_s0  ;;  %p1138_p3 = scmp.lt.s32.totalorder %s1132_s0, %s1132_s0 }
  0x29   :  { %p1139_p4 = por %p1138_p3, %p1137_p2 }
  0x2b   :  { %p1140_p5 = pnand %p1139_p4, %p1133_p1 }
  0x2d   :  { %1143 = shalt.err (!%p1140_p5)
}
  0x2e   :  { %64 = dma.hbm_to_vmem [thread:$0]  %s1252_s4, 1024, %s59_s1, [#allocation9], %s1173_s24, %s1173_s24, %s1174_s25  }
  0x2f   :  { %1164 = dma.done.wait [#allocation3], 1024  }
  0x30   :  { %1165 = vsyncadd [#allocation3], 4294966272 }
  0x31   :  { %1166 = dma.done.wait [#allocation6], 3072  }
  0x32   :  { %1167 = vsyncadd [#allocation6], 4294964224 }
  0x33   :  { %1168 = dma.done.wait [#allocation9], 1024  }
  0x34   :  { %1169 = vsyncadd [#allocation9], 4294966272  ;;  %v1032_v0 = vld [vmem:[#allocation5 + $0x78] sm:$0xff]   ;;  %v1034_v2 = vld [vmem:[#allocation5 + $0x70] sm:$0xff]  }
  0x35   :  { %v1033_v1 = vld [vmem:[#allocation5 + $0x38] sm:$0xff]   ;;  %860 = vmatprep.subr.bf16.mxu0 %v1032_v0  ;;  %v1035_v3 = vld [vmem:[#allocation5 + $0x30] sm:$0xff]   ;;  %v1036_v4 = vld [vmem:[#allocation5 + $0x68] sm:$0xff]  }
  0x36   :  { %861 = vmatpush3.bf16.msra.mxu0 %v1033_v1  ;;  %v1037_v5 = vld [vmem:[#allocation5 + $0x28] sm:$0xff]   ;;  %v1038_v6 = vld [vmem:[#allocation5 + $0x60] sm:$0xff]   ;;  %v1040_v8 = vld [vmem:[#allocation5 + $0x58] sm:$0xff]  }
  0x37   :  { %862 = vmatprep.subr.bf16.mxu0 %v1034_v2  ;;  %v1039_v7 = vld [vmem:[#allocation5 + $0x20] sm:$0xff]   ;;  %v1041_v9 = vld [vmem:[#allocation5 + $0x18] sm:$0xff]   ;;  %v1042_v10 = vld [vmem:[#allocation5 + $0x50] sm:$0xff]  }
  0x38   :  { %v101_v11 = vld [vmem:[#allocation2 + $0x8] sm:$0xff]  ;;  %v1043_v13 = vld [vmem:[#allocation5 + $0x10] sm:$0xff]   ;;  %v1048_v15 = vld [vmem:[#allocation7 + $0x38] sm:$0xff]  }
  0x39   :  { %v109_v12 = vunpack.c.l.s8.bf16 %v101_v11  ;;  %v1044_v14 = vld [vmem:[#allocation5 + $0x48] sm:$0xff]   ;;  %956 = vmatprep.subr.bf16.mxu1 %v1048_v15  ;;  %v1046_v17 = vld [vmem:[#allocation5 + $0x40] sm:$0xff]   ;;  %v111_v21 = vunpack.c.h.s8.bf16 %v101_v11  ;;  %v103_v22 = vld [vmem:[#allocation2 + $0x18] sm:$0xff] }
  0x3a   :  { %863 = vmatpush3.bf16.msra.mxu0 %v1035_v3  ;;  %v1045_v16 = vld [vmem:[#allocation5 + $0x8] sm:$0xff]   ;;  %957 = vmatpush3.bf16.msra.mxu1 %v1048_v15  ;;  %v1047_v18 = vld [vmem:[#allocation5] sm:$0xff]   ;;  %v113_v24 = vunpack.c.l.s8.bf16 %v103_v22  ;;  %v102_v25 = vld [vmem:[#allocation2 + $0x10] sm:$0xff]  ;;  %v115_v27 = vunpack.c.h.s8.bf16 %v103_v22 }
  0x3b   :  { %864 = vmatprep.subr.bf16.mxu0 %v1036_v4  ;;  %305 = vmatprep.mubr.bf16.mxu0 %v109_v12  ;;  %v100_v19 = vld [vmem:[#allocation2] sm:$0xff]  ;;  %v112_v26 = vunpack.c.l.s8.bf16 %v102_v25  ;;  %v105_v28 = vld [vmem:[#allocation2 + $0x28] sm:$0xff]  ;;  %v114_v29 = vunpack.c.h.s8.bf16 %v102_v25  ;;  %v107_v34 = vld [vmem:[#allocation2 + $0x38] sm:$0xff] }
  0x3c   :  { %v108_v20 = vunpack.c.l.s8.bf16 %v100_v19  ;;  %v110_v23 = vunpack.c.h.s8.bf16 %v100_v19  ;;  %v117_v30 = vunpack.c.l.s8.bf16 %v105_v28  ;;  %v104_v31 = vld [vmem:[#allocation2 + $0x20] sm:$0xff]  ;;  %v119_v33 = vunpack.c.h.s8.bf16 %v105_v28  ;;  %v106_v37 = vld [vmem:[#allocation2 + $0x30] sm:$0xff]  ;;  %v1050_v42 = vld [vmem:[#allocation7 + $0x28] sm:$0xff]  }
  0x3d   :  { %v116_v32 = vunpack.c.l.s8.bf16 %v104_v31  ;;  %v118_v35 = vunpack.c.h.s8.bf16 %v104_v31  ;;  %v121_v36 = vunpack.c.l.s8.bf16 %v107_v34  ;;  %v120_v38 = vunpack.c.l.s8.bf16 %v106_v37  ;;  %v1049_v41 = vld [vmem:[#allocation7 + $0x30] sm:$0xff]   ;;  %v1051_v43 = vld [vmem:[#allocation7 + $0x20] sm:$0xff]   ;;  %v1052_v44 = vld [vmem:[#allocation7 + $0x18] sm:$0xff]  }
  0x3e   :  { %865 = vmatpush3.bf16.msra.mxu0 %v1037_v5  ;;  %v123_v39 = vunpack.c.h.s8.bf16 %v107_v34  ;;  %v122_v40 = vunpack.c.h.s8.bf16 %v106_v37  ;;  %958 = vmatprep.subr.bf16.mxu1 %v1049_v41  ;;  %v1053_v45 = vld [vmem:[#allocation7 + $0x10] sm:$0xff]   ;;  %v1054_v46 = vld [vmem:[#allocation7 + $0x8] sm:$0xff]   ;;  %v1055_v47 = vld [vmem:[#allocation7] sm:$0xff]  }
  0x3f   :  { %866 = vmatprep.subr.bf16.mxu0 %v1038_v6  ;;  %959 = vmatpush3.bf16.msra.mxu1 %v1049_v41  ;;  %v1056_v48 = vld [vmem:[#allocation8 + $0x38] sm:$0xff]   ;;  %v1057_v1 = vld [vmem:[#allocation8 + $0x30] sm:$0xff]   ;;  %v1058_v6 = vld [vmem:[#allocation8 + $0x28] sm:$0xff]  }
  0x40   :  { %960 = vmatprep.subr.bf16.mxu1 %v1050_v42  ;;  %v1060_v15 = vld [vmem:[#allocation8 + $0x18] sm:$0xff]  }
  0x42   :  { %867 = vmatpush3.bf16.msra.mxu0 %v1039_v7 }
  0x43   :  { %868 = vmatprep.subr.bf16.mxu0 %v1040_v8  ;;  %961 = vmatpush3.bf16.msra.mxu1 %v1050_v42 }
  0x44   :  { %962 = vmatprep.subr.bf16.mxu1 %v1051_v43 }
  0x46   :  { %869 = vmatpush3.bf16.msra.mxu0 %v1041_v9 }
  0x47   :  { %870 = vmatprep.subr.bf16.mxu0 %v1042_v10  ;;  %963 = vmatpush3.bf16.msra.mxu1 %v1051_v43  ;;  %v1059_v10 = vld [vmem:[#allocation8 + $0x20] sm:$0xff]  }
  0x48   :  { %964 = vmatprep.subr.bf16.mxu1 %v1052_v44 }
  0x4a   :  { %871 = vmatpush3.bf16.msra.mxu0 %v1043_v13 }
  0x4b   :  { %872 = vmatprep.subr.bf16.mxu0 %v1044_v14  ;;  %965 = vmatpush3.bf16.msra.mxu1 %v1052_v44 }
  0x4c   :  { %966 = vmatprep.subr.bf16.mxu1 %v1053_v45 }
  0x4e   :  { %873 = vmatpush3.bf16.msra.mxu0 %v1045_v16 }
  0x4f   :  { %874 = vmatprep.subr.bf16.mxu0 %v1046_v17  ;;  %967 = vmatpush3.bf16.msra.mxu1 %v1053_v45  ;;  %v1061_v45 = vld [vmem:[#allocation8 + $0x10] sm:$0xff]  }
  0x50   :  { %968 = vmatprep.subr.bf16.mxu1 %v1054_v46 }
  0x52   :  { %875 = vmatpush3.bf16.msra.mxu0 %v1047_v18 }
  0x53   :  { %969 = vmatpush3.bf16.msra.mxu1 %v1054_v46  ;;  %v1062_v46 = vld [vmem:[#allocation8 + $0x8] sm:$0xff]  }
  0x54   :  { %970 = vmatprep.subr.bf16.mxu1 %v1055_v47 }
  0x55   :  { %306 = vmatmul.mubr.bf16.vlgmr.msra.gmra.mxu0 %v108_v20 }
  0x56   :  { %313 = vmatprep.mubr.bf16.mxu0 %v111_v21 }
  0x57   :  { %971 = vmatpush3.bf16.msra.mxu1 %v1055_v47  ;;  %v1063_v47 = vld [vmem:[#allocation8] sm:$0xff]  }
  0x58   :  { %988 = vmatprep.subr.bf16.mxu1 %v1056_v48 }
  0x5d   :  { %314 = vmatmul.mubr.bf16.gmra.mxu0 %v110_v23 }
  0x5e   :  { %321 = vmatprep.mubr.bf16.mxu0 %v113_v24 }
  0x65   :  { %322 = vmatmul.mubr.bf16.gmra.mxu0 %v112_v26 }
  0x66   :  { %329 = vmatprep.mubr.bf16.mxu0 %v115_v27 }
  0x6d   :  { %330 = vmatmul.mubr.bf16.gmra.mxu0 %v114_v29 }
  0x6e   :  { %337 = vmatprep.mubr.bf16.mxu0 %v117_v30 }
  0x75   :  { %338 = vmatmul.mubr.bf16.gmra.mxu0 %v116_v32 }
  0x76   :  { %345 = vmatprep.mubr.bf16.mxu0 %v119_v33 }
  0x7d   :  { %346 = vmatmul.mubr.bf16.gmra.mxu0 %v118_v35 }
  0x7e   :  { %353 = vmatprep.mubr.bf16.mxu0 %v121_v36 }
  0x85   :  { %354 = vmatmul.mubr.bf16.gmra.mxu0 %v120_v38 }
  0x86   :  { %361 = vmatprep.mubr.bf16.mxu0 %v123_v39 }
  0x8d   :  { %362 = vmatmul.mubr.bf16.gmra.mxu0 %v122_v40 }
 0x115   :  { %v876_v49 = vpop.f32.mrf.mxu0 }
 0x117   :  { %v877_v50 = vpop.f32.mrf.mxu0 }
 0x118   :  { %v878_v52 = vadd.f32 %v877_v50, %v876_v49  ;;  %v842_v50 = vld [vmem:[%s1251_s3] ss:$0 sm:$0xff] }
 0x119   :  { %v879_v51 = vpop.f32.mrf.mxu0 }
 0x11b   :  { %v880_v53 = vpop.f32.mrf.mxu0 }
 0x11c   :  { %v881_v54 = vadd.f32 %v880_v53, %v879_v51 }
 0x11d   :  { %v882_v55 = vpop.f32.mrf.mxu0 }
 0x11e   :  { %v421_v57 = vpack.c.bf16 %v881_v54, %v878_v52 }
 0x11f   :  { %v883_v56 = vpop.f32.mrf.mxu0 }
 0x120   :  { %v884_v59 = vadd.f32 %v883_v56, %v882_v55  ;;  %972 = vmatprep.mubr.bf16.mxu1 %v421_v57 }
 0x121   :  { %v885_v58 = vpop.f32.mrf.mxu0 }
 0x123   :  { %v886_v60 = vpop.f32.mrf.mxu0 }
 0x124   :  { %v887_v61 = vadd.f32 %v886_v60, %v885_v58 }
 0x125   :  { %v888_v62 = vpop.f32.mrf.mxu0 }
 0x126   :  { %v422_v0 = vpack.c.bf16 %v887_v61, %v884_v59 }
 0x127   :  { %v889_v63 = vpop.f32.mrf.mxu0 }
 0x128   :  { %v890_v3 = vadd.f32 %v889_v63, %v888_v62  ;;  %973 = vmatmul.mubr.bf16.vlgmr.msra.gmra.mxu1 %v422_v0 }
 0x129   :  { %v891_v2 = vpop.f32.mrf.mxu0  ;;  %989 = vmatpush3.bf16.msra.mxu1 %v1056_v48 }
 0x12a   :  { %990 = vmatprep.subr.bf16.mxu1 %v1057_v1 }
 0x12b   :  { %v892_v4 = vpop.f32.mrf.mxu0 }
 0x12c   :  { %v893_v5 = vadd.f32 %v892_v4, %v891_v2 }
 0x12d   :  { %v894_v7 = vpop.f32.mrf.mxu0  ;;  %991 = vmatpush3.bf16.msra.mxu1 %v1057_v1 }
 0x12e   :  { %v423_v9 = vpack.c.bf16 %v893_v5, %v890_v3  ;;  %992 = vmatprep.subr.bf16.mxu1 %v1058_v6 }
 0x12f   :  { %v895_v8 = vpop.f32.mrf.mxu0 }
 0x130   :  { %v896_v12 = vadd.f32 %v895_v8, %v894_v7  ;;  %976 = vmatprep.mubr.bf16.mxu1 %v423_v9 }
 0x131   :  { %v897_v11 = vpop.f32.mrf.mxu0  ;;  %993 = vmatpush3.bf16.msra.mxu1 %v1058_v6 }
 0x132   :  { %994 = vmatprep.subr.bf16.mxu1 %v1059_v10 }
 0x133   :  { %v898_v13 = vpop.f32.mrf.mxu0 }
 0x134   :  { %v899_v14 = vadd.f32 %v898_v13, %v897_v11 }
 0x135   :  { %v900_v16 = vpop.f32.mrf.mxu0  ;;  %995 = vmatpush3.bf16.msra.mxu1 %v1059_v10 }
 0x136   :  { %v424_v18 = vpack.c.bf16 %v899_v14, %v896_v12  ;;  %996 = vmatprep.subr.bf16.mxu1 %v1060_v15 }
 0x137   :  { %v901_v17 = vpop.f32.mrf.mxu0 }
 0x138   :  { %v902_v20 = vadd.f32 %v901_v17, %v900_v16  ;;  %977 = vmatmul.mubr.bf16.gmra.mxu1 %v424_v18 }
 0x139   :  { %v903_v19 = vpop.f32.mrf.mxu0  ;;  %997 = vmatpush3.bf16.msra.mxu1 %v1060_v15 }
 0x13a   :  { %998 = vmatprep.subr.bf16.mxu1 %v1061_v45 }
 0x13b   :  { %v904_v21 = vpop.f32.mrf.mxu0 }
 0x13c   :  { %v905_v22 = vadd.f32 %v904_v21, %v903_v19 }
 0x13d   :  { %v906_v23 = vpop.f32.mrf.mxu0  ;;  %999 = vmatpush3.bf16.msra.mxu1 %v1061_v45 }
 0x13e   :  { %v425_v25 = vpack.c.bf16 %v905_v22, %v902_v20  ;;  %1000 = vmatprep.subr.bf16.mxu1 %v1062_v46 }
 0x13f   :  { %v907_v24 = vpop.f32.mrf.mxu0 }
 0x140   :  { %v908_v27 = vadd.f32 %v907_v24, %v906_v23  ;;  %980 = vmatprep.mubr.bf16.mxu1 %v425_v25 }
 0x141   :  { %v909_v26 = vpop.f32.mrf.mxu0  ;;  %1001 = vmatpush3.bf16.msra.mxu1 %v1062_v46 }
 0x142   :  { %1002 = vmatprep.subr.bf16.mxu1 %v1063_v47 }
 0x143   :  { %v910_v28 = vpop.f32.mrf.mxu0 }
 0x144   :  { %v911_v29 = vadd.f32 %v910_v28, %v909_v26 }
 0x145   :  { %v912_v30 = vpop.f32.mrf.mxu0  ;;  %1003 = vmatpush3.bf16.msra.mxu1 %v1063_v47 }
 0x146   :  { %v426_v32 = vpack.c.bf16 %v911_v29, %v908_v27 }
 0x147   :  { %v913_v31 = vpop.f32.mrf.mxu0 }
 0x148   :  { %v914_v34 = vadd.f32 %v913_v31, %v912_v30  ;;  %981 = vmatmul.mubr.bf16.gmra.mxu1 %v426_v32 }
 0x149   :  { %v915_v33 = vpop.f32.mrf.mxu0 }
 0x14b   :  { %v916_v35 = vpop.f32.mrf.mxu0 }
 0x14c   :  { %v917_v36 = vadd.f32 %v916_v35, %v915_v33 }
 0x14d   :  { %v918_v37 = vpop.f32.mrf.mxu0 }
 0x14e   :  { %v427_v39 = vpack.c.bf16 %v917_v36, %v914_v34 }
 0x14f   :  { %v919_v38 = vpop.f32.mrf.mxu0 }
 0x150   :  { %v920_v41 = vadd.f32 %v919_v38, %v918_v37  ;;  %984 = vmatprep.mubr.bf16.mxu1 %v427_v39 }
 0x151   :  { %v921_v40 = vpop.f32.mrf.mxu0 }
 0x153   :  { %v922_v42 = vpop.f32.mrf.mxu0 }
 0x154   :  { %v923_v43 = vadd.f32 %v922_v42, %v921_v40 }
 0x156   :  { %v428_v44 = vpack.c.bf16 %v923_v43, %v920_v41  ;;  %v851_v41 = vld [vmem:[%s1253_s5] ss:$0 sm:$0xff]  ;;  %s1180_s5 = smov [#allocation10]  }
 0x157   :  { %s810_s20 = sshll.u32 %s1180_s5, 4  ;;  %s811_s20 = int_to_ptr.vmem [resolvable:$true] %s810_s20 }
 0x158   :  { %985 = vmatmul.mubr.bf16.gmra.mxu1 %v428_v44  ;;  %s1144_s21 = scalar_lea.vmem %s811_s20, 2048  ;;  %p1149_p7 = scmp.lt.s32.totalorder %s811_s20, %s811_s20 }
 0x159   :  { %p1145_p6 = scmp.ne.s32.totalorder %s811_s20, %s1144_s21  ;;  %p1150_p8 = scmp.lt.s32.totalorder %s1144_s21, %s1144_s21 }
 0x15b   :  { %p1151_p9 = por %p1150_p8, %p1149_p7 }
 0x15d   :  { %p1152_p10 = pnand %p1151_p9, %p1145_p6 }
 0x1e8   :  { %v974_v48 = vpop.f32.mrf.mxu1 }
 0x1e9   :  { %v543_v54 = vadd.f32 %v974_v48, %v842_v50 }
 0x1ea   :  { %v534_v49 = vpop.f32.mrf.mxu1 }
 0x1eb   :  { %v535_v52 = vadd.f32 %v842_v50, %v534_v49  ;;  %v599_v60 = vmax.f32 %v543_v54, 0.0 }
 0x1ec   :  { %v975_v51 = vpop.f32.mrf.mxu1 }
 0x1ed   :  { %v546_v53 = vadd.f32 %v975_v51, %v842_v50  ;;  %v597_v58 = vmax.f32 %v535_v52, 0.0 }
 0x1ee   :  { %v537_v55 = vpop.f32.mrf.mxu1 }
 0x1ef   :  { %v538_v56 = vadd.f32 %v842_v50, %v537_v55  ;;  %v600_v57 = vmax.f32 %v546_v53, 0.0 }
 0x1f1   :  { %v598_v59 = vmax.f32 %v538_v56, 0.0  ;;  %v614_v62 = vpack.c.bf16 %v600_v57, %v599_v60 }
 0x1f3   :  { %v613_v61 = vpack.c.bf16 %v598_v59, %v597_v58 }
 0x1f5   :  { %1004 = vmatprep.mubr.bf16.mxu1 %v613_v61 }
 0x1f6   :  { %1005 = vmatmul.mubr.bf16.vlgmr.msra.gmra.mxu1 %v614_v62 }
 0x1f8   :  { %v978_v63 = vpop.f32.mrf.mxu1 }
 0x1f9   :  { %v559_v4 = vadd.f32 %v978_v63, %v842_v50 }
 0x1fa   :  { %v550_v0 = vpop.f32.mrf.mxu1 }
 0x1fb   :  { %v551_v2 = vadd.f32 %v842_v50, %v550_v0  ;;  %v603_v10 = vmax.f32 %v559_v4, 0.0 }
 0x1fc   :  { %v979_v1 = vpop.f32.mrf.mxu1 }
 0x1fd   :  { %v562_v3 = vadd.f32 %v979_v1, %v842_v50  ;;  %v601_v8 = vmax.f32 %v551_v2, 0.0 }
 0x1fe   :  { %v553_v5 = vpop.f32.mrf.mxu1 }
 0x1ff   :  { %v554_v6 = vadd.f32 %v842_v50, %v553_v5  ;;  %v604_v7 = vmax.f32 %v562_v3, 0.0 }
 0x201   :  { %v602_v9 = vmax.f32 %v554_v6, 0.0  ;;  %v616_v12 = vpack.c.bf16 %v604_v7, %v603_v10 }
 0x203   :  { %v615_v11 = vpack.c.bf16 %v602_v9, %v601_v8 }
 0x205   :  { %1008 = vmatprep.mubr.bf16.mxu1 %v615_v11 }
 0x206   :  { %1009 = vmatmul.mubr.bf16.gmra.mxu1 %v616_v12 }
 0x208   :  { %v982_v13 = vpop.f32.mrf.mxu1 }
 0x209   :  { %v575_v18 = vadd.f32 %v982_v13, %v842_v50 }
 0x20a   :  { %v566_v14 = vpop.f32.mrf.mxu1 }
 0x20b   :  { %v567_v16 = vadd.f32 %v842_v50, %v566_v14  ;;  %v607_v24 = vmax.f32 %v575_v18, 0.0 }
 0x20c   :  { %v983_v15 = vpop.f32.mrf.mxu1 }
 0x20d   :  { %v578_v17 = vadd.f32 %v983_v15, %v842_v50  ;;  %v605_v22 = vmax.f32 %v567_v16, 0.0 }
 0x20e   :  { %v569_v19 = vpop.f32.mrf.mxu1 }
 0x20f   :  { %v570_v20 = vadd.f32 %v842_v50, %v569_v19  ;;  %v608_v21 = vmax.f32 %v578_v17, 0.0 }
 0x211   :  { %v606_v23 = vmax.f32 %v570_v20, 0.0  ;;  %v618_v26 = vpack.c.bf16 %v608_v21, %v607_v24 }
 0x213   :  { %v617_v25 = vpack.c.bf16 %v606_v23, %v605_v22 }
 0x215   :  { %1012 = vmatprep.mubr.bf16.mxu1 %v617_v25 }
 0x216   :  { %1013 = vmatmul.mubr.bf16.gmra.mxu1 %v618_v26 }
 0x218   :  { %v986_v27 = vpop.f32.mrf.mxu1 }
 0x219   :  { %v591_v32 = vadd.f32 %v986_v27, %v842_v50 }
 0x21a   :  { %v582_v28 = vpop.f32.mrf.mxu1 }
 0x21b   :  { %v583_v30 = vadd.f32 %v842_v50, %v582_v28  ;;  %v611_v38 = vmax.f32 %v591_v32, 0.0 }
 0x21c   :  { %v987_v29 = vpop.f32.mrf.mxu1 }
 0x21d   :  { %v594_v31 = vadd.f32 %v987_v29, %v842_v50  ;;  %v609_v36 = vmax.f32 %v583_v30, 0.0 }
 0x21e   :  { %v585_v33 = vpop.f32.mrf.mxu1 }
 0x21f   :  { %v586_v34 = vadd.f32 %v842_v50, %v585_v33  ;;  %v612_v35 = vmax.f32 %v594_v31, 0.0 }
 0x221   :  { %v610_v37 = vmax.f32 %v586_v34, 0.0  ;;  %v620_v40 = vpack.c.bf16 %v612_v35, %v611_v38 }
 0x223   :  { %v619_v39 = vpack.c.bf16 %v610_v37, %v609_v36 }
 0x225   :  { %1016 = vmatprep.mubr.bf16.mxu1 %v619_v39 }
 0x226   :  { %1017 = vmatmul.mubr.bf16.gmra.mxu1 %v620_v40 }
 0x2b6   :  { %v1006_v42 = vpop.f32.mrf.mxu1 }
 0x2b7   :  { %v735_v43 = vadd.f32 %v1006_v42, %v851_v41 }
 0x2b8   :  { %v726_v44 = vpop.f32.mrf.mxu1 }
 0x2b9   :  { %791 = vst [vmem:[#allocation10 + $0x10] sm:$0xff] %v735_v43  ;;  %v727_v45 = vadd.f32 %v851_v41, %v726_v44 }
 0x2ba   :  { %v1007_v46 = vpop.f32.mrf.mxu1 }
 0x2bb   :  { %789 = vst [vmem:[#allocation10] sm:$0xff] %v727_v45  ;;  %v738_v47 = vadd.f32 %v1007_v46, %v851_v41 }
 0x2bc   :  { %v729_v48 = vpop.f32.mrf.mxu1 }
 0x2bd   :  { %792 = vst [vmem:[#allocation10 + $0x18] sm:$0xff] %v738_v47  ;;  %v730_v49 = vadd.f32 %v851_v41, %v729_v48 }
 0x2bf   :  { %790 = vst [vmem:[#allocation10 + $0x8] sm:$0xff] %v730_v49 }
 0x2c6   :  { %v1010_v50 = vpop.f32.mrf.mxu1 }
 0x2c7   :  { %v751_v51 = vadd.f32 %v1010_v50, %v851_v41 }
 0x2c8   :  { %v742_v52 = vpop.f32.mrf.mxu1 }
 0x2c9   :  { %795 = vst [vmem:[#allocation10 + $0x30] sm:$0xff] %v751_v51  ;;  %v743_v53 = vadd.f32 %v851_v41, %v742_v52 }
 0x2ca   :  { %v1011_v54 = vpop.f32.mrf.mxu1 }
 0x2cb   :  { %793 = vst [vmem:[#allocation10 + $0x20] sm:$0xff] %v743_v53  ;;  %v754_v55 = vadd.f32 %v1011_v54, %v851_v41 }
 0x2cc   :  { %v745_v56 = vpop.f32.mrf.mxu1 }
 0x2cd   :  { %796 = vst [vmem:[#allocation10 + $0x38] sm:$0xff] %v754_v55  ;;  %v746_v57 = vadd.f32 %v851_v41, %v745_v56 }
 0x2cf   :  { %794 = vst [vmem:[#allocation10 + $0x28] sm:$0xff] %v746_v57 }
 0x2d6   :  { %v1014_v58 = vpop.f32.mrf.mxu1 }
 0x2d7   :  { %v767_v59 = vadd.f32 %v1014_v58, %v851_v41 }
 0x2d8   :  { %v758_v60 = vpop.f32.mrf.mxu1 }
 0x2d9   :  { %799 = vst [vmem:[#allocation10 + $0x50] sm:$0xff] %v767_v59  ;;  %v759_v61 = vadd.f32 %v851_v41, %v758_v60 }
 0x2da   :  { %v1015_v62 = vpop.f32.mrf.mxu1 }
 0x2db   :  { %797 = vst [vmem:[#allocation10 + $0x40] sm:$0xff] %v759_v61  ;;  %v770_v63 = vadd.f32 %v1015_v62, %v851_v41 }
 0x2dc   :  { %v761_v0 = vpop.f32.mrf.mxu1 }
 0x2dd   :  { %800 = vst [vmem:[#allocation10 + $0x58] sm:$0xff] %v770_v63  ;;  %v762_v1 = vadd.f32 %v851_v41, %v761_v0 }
 0x2df   :  { %798 = vst [vmem:[#allocation10 + $0x48] sm:$0xff] %v762_v1 }
 0x2e6   :  { %v1018_v2 = vpop.f32.mrf.mxu1 }
 0x2e7   :  { %v783_v3 = vadd.f32 %v1018_v2, %v851_v41 }
 0x2e8   :  { %v774_v4 = vpop.f32.mrf.mxu1 }
 0x2e9   :  { %803 = vst [vmem:[#allocation10 + $0x70] sm:$0xff] %v783_v3  ;;  %v775_v5 = vadd.f32 %v851_v41, %v774_v4 }
 0x2ea   :  { %v1019_v6 = vpop.f32.mrf.mxu1 }
 0x2eb   :  { %801 = vst [vmem:[#allocation10 + $0x60] sm:$0xff] %v775_v5  ;;  %v786_v7 = vadd.f32 %v1019_v6, %v851_v41 }
 0x2ec   :  { %v777_v8 = vpop.f32.mrf.mxu1 }
 0x2ed   :  { %804 = vst [vmem:[#allocation10 + $0x78] sm:$0xff] %v786_v7  ;;  %v778_v9 = vadd.f32 %v851_v41, %v777_v8 }
 0x2ef   :  { %802 = vst [vmem:[#allocation10 + $0x68] sm:$0xff] %v778_v9 }
 0x2f0   :  { %1155 = shalt.err (!%p1152_p10)
}
 0x2f1   :  { %s1181_s22 = smov 128   ;;  %s1182_s23 = smov 8  }
 0x2f2   :  { %816 = dma.vmem_to_hbm [thread:$0]  %s811_s20, 2048, %s1254_s6, [#allocation4], %s1181_s22, %s1181_s22, %s1182_s23  }
 0x2f3   :  { %1170 = dma.done.wait [#allocation4], 2048  }
 0x2f4   :  { %1171 = vsyncadd [#allocation4], 4294965248 }
 0x2f5   :  { %820 = vsyncpa [#allocation3], 1 }
 0x2f6   :  { %821 = vsyncpa [#allocation6], 1 }
 0x2f7   :  { %822 = vsyncpa [#allocation9], 1 }
 0x2f8   :  { %823 = vsyncpa [#allocation4], 1 }

</bundles_post_ra>
